<compile_context>
chip_gen: v7x
topology: tpu7x:2x2x1
jax: 0.10.0
libtpu: 0.0.40
codegen_flags: <defaults>
</compile_context>

<pallas_src>
import jax
import jax.numpy as jnp
from jax.experimental import pallas as pl
from jax.experimental.pallas import tpu as pltpu


def _round_up(x: int, m: int) -> int:
    return ((x + m - 1) // m) * m


def _ensemble_argmax_kernel(x_ref, w_ref, out_ref, max_sc, idx_sc):
    """Grid = (N tiles ["parallel"], V tiles ["arbitrary", innermost]).

    x_ref:   (TILE_N, D_PAD)   input rows (original dtype), resident across V
    w_ref:   (D_PAD, TILE_V)   bf16 pre-summed ensemble weights (+ bias row)
    out_ref: (TILE_N, 1)       int32 argmax predictions (written at last V tile)
    max_sc:  (TILE_N, 128)     f32  lane-dense running max      (VMEM scratch)
    idx_sc:  (TILE_N, 128)     i32  lane-dense running argmax   (VMEM scratch)
    """
    v = pl.program_id(1)
    tile_v = w_ref.shape[1]

    @pl.when(v == 0)
    def _init():
        max_sc[...] = jnp.full_like(max_sc, -jnp.inf)
        idx_sc[...] = jnp.zeros_like(idx_sc)

    # One bf16 MXU matmul per (N tile, V tile); x cast in-kernel, f32 accumulate.
    # The bias is the ones-column row of W, so there is no separate broadcast add.
    logits = jnp.dot(x_ref[...].astype(jnp.bfloat16), w_ref[...],
                     preferred_element_type=jnp.float32)        # (TILE_N, TILE_V) f32

    lane = jax.lax.broadcasted_iota(jnp.int32, (1, 128), 1)     # (1, 128)
    base = v * tile_v

    # Lane-dense online argmax: VPU compare/select per 128-lane group.
    # Strict '>' keeps the first occurrence (smallest index) per lane since
    # groups and V tiles are processed in increasing-index order.
    for g in range(tile_v // 128):                              # static unroll (<=16)
        vals = logits[:, g * 128:(g + 1) * 128]                 # (TILE_N, 128) f32
        idxs = lane + (base + g * 128)                          # (1, 128) i32
        better = vals > max_sc[...]
        idx_sc[...] = jnp.where(better, idxs, idx_sc[...])
        max_sc[...] = jnp.where(better, vals, max_sc[...])

    @pl.when(v == pl.num_programs(1) - 1)
    def _finalize():
        # Cross-lane reductions happen only here, once per N tile.
        row_max = jnp.max(max_sc[...], axis=-1, keepdims=True)              # (TILE_N, 1)
        cand = jnp.where(max_sc[...] == row_max,
                         idx_sc[...].astype(jnp.float32), jnp.float32(3e9))
        # Min index among maximal lanes == exact first-index tie-breaking
        # (indices << 2^24, so the f32 min is exact).
        out_ref[...] = jnp.min(cand, axis=-1, keepdims=True).astype(jnp.int32)


def ensemble_search(inputs, input_lengths, weights, biases, *,
                    max_tile_n: int = 1024, max_tile_v: int = 2048):
    """Pallas implementation of EnsembleSearch.forward with linear members.

    inputs:        (B, T, D) float (f32 or bf16)
    input_lengths: (B,) int32  -- consumed by real sub-models; unused here.
    weights:       (M, D, V) float32  (one linear head per ensemble member)
    biases:        (M, 1, V) float32
    returns:       (B, T) int32 predictions
    """
    del input_lengths  # TODO(synk): real sub-models would consume / mask by lengths.
    B, T, D = inputs.shape
    M, _, V = weights.shape
    assert M > 1, "Ensemble search should be multiple models."

    N = B * T

    # ---- linear-member algebra: pre-sum W and b once (tiny M*D*V reduce) ----
    w_sum = jnp.sum(weights, axis=0)                    # (D, V) f32
    b_sum = jnp.sum(biases, axis=0).reshape(V)          # (V,)   f32

    # ---- generation-aware VMEM budget ---------------------------------------
    try:
        vmem_phys = int(pltpu.get_tpu_info().vmem_capacity_bytes)
    except Exception:
        vmem_phys = 64 * 1024 * 1024                    # v7x-safe fallback
    vmem_limit = min((vmem_phys * 3) // 4, 100 * 1024 * 1024)   # ~96 MiB v5e/v6e, ~48 MiB v7x
    budget = (vmem_limit * 85) // 100

    d_pad = _round_up(D + 1, 128)                       # +1 row: bias folded into W
    v_pad128 = _round_up(V, 128)

    # N tile: as large as possible (arithmetic intensity vs. the W stream is
    # ~tile_n flop/B), but expose >=2 N tiles when the problem is big enough so
    # the "parallel" axis can span both v7x TensorCores.
    tile_n = max_tile_n
    if pl.cdiv(N, tile_n) < 2:
        tile_n = min(max_tile_n, max(256, _round_up(pl.cdiv(max(N, 1), 2), 256)))
    n_pad = _round_up(N, tile_n)
    n_tiles = n_pad // tile_n

    # V tile from the VMEM cost model: triple-buffered x tile (original dtype),
    # double-buffered bf16 W tile, f32 logits intermediate, lane-dense scratch.
    x_elt = jnp.dtype(inputs.dtype).itemsize
    fixed = 3 * tile_n * d_pad * x_elt + tile_n * 128 * 8 + 2 * tile_n * 4
    per_v_col = 2 * d_pad * 2 + tile_n * 4
    fit_cols = max(128, ((budget - fixed) // max(per_v_col, 1)) // 128 * 128)
    tile_v = int(min(v_pad128, fit_cols, max_tile_v))
    v_pad = _round_up(V, tile_v)
    v_tiles = v_pad // tile_v
    # When v_tiles == 1 the W block index is constant across the whole grid,
    # so the summed W is DMA'd from HBM exactly once and stays VMEM-resident.

    # ---- build padded operands ----------------------------------------------
    NEG = jnp.float32(-1e30)                            # padded vocab cols never win
    x2d = inputs.reshape(N, D)
    x_ext = jnp.zeros((n_pad, d_pad), inputs.dtype)
    x_ext = x_ext.at[:N, :D].set(x2d)
    x_ext = x_ext.at[:N, D].set(jnp.asarray(1, inputs.dtype))   # ones col -> bias row

    w_ext = jnp.zeros((d_pad, v_pad), jnp.float32)
    w_ext = w_ext.at[:D, :V].set(w_sum)
    w_ext = w_ext.at[D, :V].set(b_sum)                  # bias row (hit by ones column)
    if v_pad > V:
        w_ext = w_ext.at[D, V:].set(NEG)
    w_bf = w_ext.astype(jnp.bfloat16)                   # halve the dominant HBM stream

    # ---- pallas_call ---------------------------------------------------------
    if n_tiles > 1:
        # Deeper prefetch of the x tile hides the x DMA at N-tile boundaries.
        x_spec = pl.BlockSpec((tile_n, d_pad), lambda n, v: (n, 0),
                              pipeline_mode=pl.Buffered(3))
    else:
        x_spec = pl.BlockSpec((tile_n, d_pad), lambda n, v: (n, 0))

    preds = pl.pallas_call(
        _ensemble_argmax_kernel,
        out_shape=jax.ShapeDtypeStruct((n_pad, 1), jnp.int32),
        grid_spec=pltpu.PrefetchScalarGridSpec(
            num_scalar_prefetch=0,
            grid=(n_tiles, v_tiles),
            in_specs=[
                x_spec,                                             # x tile (resident over V)
                pl.BlockSpec((d_pad, tile_v), lambda n, v: (0, v)),  # summed W (+bias row)
            ],
            out_specs=pl.BlockSpec((tile_n, 1), lambda n, v: (n, 0)),
            scratch_shapes=[
                pltpu.VMEM((tile_n, 128), jnp.float32),  # lane-dense running max
                pltpu.VMEM((tile_n, 128), jnp.int32),    # lane-dense running argmax
            ],
        ),
        compiler_params=pltpu.CompilerParams(
            dimension_semantics=("parallel", "arbitrary"),
            vmem_limit_bytes=int(vmem_limit),
        ),
    )(x_ext, w_bf)

    return preds[:N, 0].reshape(B, T)


if __name__ == "__main__":
    # Small shapes: batch=2, seq=8, dim=32, vocab=128, ensemble of 3 models.
    B, T, D, V, M = 2, 8, 32, 128, 3

    key = jax.random.PRNGKey(0)
    k_x, k_w, k_b = jax.random.split(key, 3)

    inputs = jax.random.normal(k_x, (B, T, D), dtype=jnp.float32)
    input_lengths = jnp.full((B,), T, dtype=jnp.int32)
    weights = 0.1 * jax.random.normal(k_w, (M, D, V), dtype=jnp.float32)
    biases = 0.01 * jax.random.normal(k_b, (M, 1, V), dtype=jnp.float32)

    preds = ensemble_search(inputs, input_lengths, weights, biases)
    preds = jax.block_until_ready(preds)

    # Reference: original module semantics (per-model f32 logits, summed, argmax).
    logits = jnp.einsum("btd,mdv->mbtv", inputs, weights) + biases[:, None, :, :]
    summed = jnp.sum(logits, axis=0)                       # (B, T, V)
    ref = jnp.argmax(summed, axis=-1).astype(jnp.int32)

    # bf16 MXU operands can only flip the argmax on near-ties; accept a
    # mismatch only where the reference top-2 logit gap is within rounding noise.
    top2 = jax.lax.top_k(summed, 2)[0]
    gap = top2[..., 0] - top2[..., 1]
    tol = 5e-2
    ok = (preds == ref) | (gap <= tol)

    assert preds.shape == (B, T) and preds.dtype == jnp.int32
    assert bool(jnp.all(ok))

    print("KERNEL_OK")
</pallas_src>

<mosaic_0001>
module attributes {stable_mosaic.version = 11 : i64} {
  func.func @_ensemble_argmax_kernel(%arg0: i32, %arg1: i32, %arg2: memref<256x128xf32, #tpu.memory_space<vmem>>, %arg3: memref<128x128xbf16, #tpu.memory_space<vmem>>, %arg4: memref<256x1xi32, #tpu.memory_space<vmem>>, %arg5: memref<256x128xf32, #tpu.memory_space<vmem>>, %arg6: memref<256x128xi32, #tpu.memory_space<vmem>>) attributes {dimension_semantics = [#tpu.dimension_semantics<parallel>, #tpu.dimension_semantics<arbitrary>], iteration_bounds = array<i64: 1, 1>, scalar_prefetch = 0 : i64, scratch_operands = 2 : i64, tpu.core_type = #tpu.core_type<tc>, window_params = [{transform_indices = @transform_0, window_bounds = array<i64: 256, 128>}, {transform_indices = @transform_1, window_bounds = array<i64: 128, 128>}, {transform_indices = @transform_2, window_bounds = array<i64: 256, 1>}]} {
    %c0_i32 = arith.constant 0 : i32
    %0 = arith.cmpi eq, %arg1, %c0_i32 : i32
    %1 = arith.extui %0 : i1 to i32
    %c0_i32_0 = arith.constant 0 : i32
    %2 = arith.cmpi ne, %1, %c0_i32_0 : i32
    scf.if %2 {
      %cst_17 = arith.constant 0xFF800000 : f32
      %25 = vector.broadcast %cst_17 : f32 to vector<256x128xf32>
      %c0_18 = arith.constant 0 : index
      %c0_19 = arith.constant 0 : index
      %26 = vector.load %arg5[%c0_18, %c0_19] : memref<256x128xf32, #tpu.memory_space<vmem>>, vector<256x128xf32>
      tpu.vector_store %arg5[%c0_18, %c0_19], %25 {strides = array<i32>} : memref<256x128xf32, #tpu.memory_space<vmem>>, vector<256x128xf32>,
      %c0_i32_20 = arith.constant 0 : i32
      %27 = vector.broadcast %c0_i32_20 : i32 to vector<256x128xi32>
      %c0_21 = arith.constant 0 : index
      %c0_22 = arith.constant 0 : index
      %28 = vector.load %arg6[%c0_21, %c0_22] : memref<256x128xi32, #tpu.memory_space<vmem>>, vector<256x128xi32>
      tpu.vector_store %arg6[%c0_21, %c0_22], %27 {strides = array<i32>} : memref<256x128xi32, #tpu.memory_space<vmem>>, vector<256x128xi32>,
    } else {
    }
    %c0 = arith.constant 0 : index
    %c0_1 = arith.constant 0 : index
    %3 = vector.load %arg2[%c0, %c0_1] : memref<256x128xf32, #tpu.memory_space<vmem>>, vector<256x128xf32>
    %4 = arith.truncf %3 : vector<256x128xf32> to vector<256x128xbf16>
    %c0_2 = arith.constant 0 : index
    %c0_3 = arith.constant 0 : index
    %5 = vector.load %arg3[%c0_2, %c0_3] : memref<128x128xbf16, #tpu.memory_space<vmem>>, vector<128x128xbf16>
    %cst = arith.constant dense<0.000000e+00> : vector<256x128xf32>
    %6 = tpu.matmul %4, %5, %cst {dimension_numbers = #tpu.dot_dimension_numbers<[1], [0], [0], [1], [0, 0, 1, 1], [], []>} : vector<256x128xbf16>, vector<128x128xbf16>, vector<256x128xf32> -> vector<256x128xf32>
    %7 = tpu.iota {dimensions = array<i32: 1>} : vector<1x128xi32>
    %c128_i32 = arith.constant 128 : i32
    %8 = arith.muli %arg1, %c128_i32 : i32
    %c0_i32_4 = arith.constant 0 : i32
    %9 = arith.addi %8, %c0_i32_4 : i32
    %10 = vector.broadcast %9 : i32 to vector<1x128xi32>
    %11 = arith.addi %7, %10 : vector<1x128xi32>
    %c0_5 = arith.constant 0 : index
    %c0_6 = arith.constant 0 : index
    %12 = vector.load %arg5[%c0_5, %c0_6] : memref<256x128xf32, #tpu.memory_space<vmem>>, vector<256x128xf32>
    %13 = arith.cmpf ogt, %6, %12 : vector<256x128xf32>
    %c0_7 = arith.constant 0 : index
    %c0_8 = arith.constant 0 : index
    %14 = vector.load %arg6[%c0_7, %c0_8] : memref<256x128xi32, #tpu.memory_space<vmem>>, vector<256x128xi32>
    %15 = vector.shape_cast %11 : vector<1x128xi32> to vector<1x128xi32>
    %16 = vector.broadcast %15 : vector<1x128xi32> to vector<256x128xi32>
    %17 = arith.select %13, %16, %14 : vector<256x128xi1>, vector<256x128xi32>
    %c0_9 = arith.constant 0 : index
    %c0_10 = arith.constant 0 : index
    %18 = vector.load %arg6[%c0_9, %c0_10] : memref<256x128xi32, #tpu.memory_space<vmem>>, vector<256x128xi32>
    tpu.vector_store %arg6[%c0_9, %c0_10], %17 {strides = array<i32>} : memref<256x128xi32, #tpu.memory_space<vmem>>, vector<256x128xi32>,
    %c0_11 = arith.constant 0 : index
    %c0_12 = arith.constant 0 : index
    %19 = vector.load %arg5[%c0_11, %c0_12] : memref<256x128xf32, #tpu.memory_space<vmem>>, vector<256x128xf32>
    %20 = arith.select %13, %6, %19 : vector<256x128xi1>, vector<256x128xf32>
    %c0_13 = arith.constant 0 : index
    %c0_14 = arith.constant 0 : index
    %21 = vector.load %arg5[%c0_13, %c0_14] : memref<256x128xf32, #tpu.memory_space<vmem>>, vector<256x128xf32>
    tpu.vector_store %arg5[%c0_13, %c0_14], %20 {strides = array<i32>} : memref<256x128xf32, #tpu.memory_space<vmem>>, vector<256x128xf32>,
    %c0_i32_15 = arith.constant 0 : i32
    %22 = arith.cmpi eq, %arg1, %c0_i32_15 : i32
    %23 = arith.extui %22 : i1 to i32
    %c0_i32_16 = arith.constant 0 : i32
    %24 = arith.cmpi ne, %23, %c0_i32_16 : i32
    scf.if %24 {
      %c0_17 = arith.constant 0 : index
      %c0_18 = arith.constant 0 : index
      %25 = vector.load %arg5[%c0_17, %c0_18] : memref<256x128xf32, #tpu.memory_space<vmem>>, vector<256x128xf32>
      %cst_19 = arith.constant dense<0xFF800000> : vector<256xf32>
      %26 = vector.multi_reduction <maximumf>, %25, %cst_19 [1] : vector<256x128xf32> to vector<256xf32>
      %27 = vector.shape_cast %26 : vector<256xf32> to vector<256x1xf32>
      %c0_20 = arith.constant 0 : index
      %c0_21 = arith.constant 0 : index
      %28 = vector.load %arg5[%c0_20, %c0_21] : memref<256x128xf32, #tpu.memory_space<vmem>>, vector<256x128xf32>
      %29 = vector.broadcast %27 : vector<256x1xf32> to vector<256x128xf32>
      %30 = arith.cmpf oeq, %28, %29 : vector<256x128xf32>
      %c0_22 = arith.constant 0 : index
      %c0_23 = arith.constant 0 : index
      %31 = vector.load %arg6[%c0_22, %c0_23] : memref<256x128xi32, #tpu.memory_space<vmem>>, vector<256x128xi32>
      %32 = arith.sitofp %31 : vector<256x128xi32> to vector<256x128xf32>
      %cst_24 = arith.constant 3.000000e+09 : f32
      %33 = vector.broadcast %cst_24 : f32 to vector<256x128xf32>
      %34 = arith.select %30, %32, %33 : vector<256x128xi1>, vector<256x128xf32>
      %cst_25 = arith.constant dense<0x7F800000> : vector<256xf32>
      %35 = vector.multi_reduction <minimumf>, %34, %cst_25 [1] : vector<256x128xf32> to vector<256xf32>
      %36 = vector.shape_cast %35 : vector<256xf32> to vector<256x1xf32>
      %37 = arith.fptosi %36 : vector<256x1xf32> to vector<256x1xi32>
      %c0_26 = arith.constant 0 : index
      %c0_27 = arith.constant 0 : index
      %38 = vector.load %arg4[%c0_26, %c0_27] : memref<256x1xi32, #tpu.memory_space<vmem>>, vector<256x1xi32>
      tpu.vector_store %arg4[%c0_26, %c0_27], %37 {strides = array<i32>} : memref<256x1xi32, #tpu.memory_space<vmem>>, vector<256x1xi32>,
    } else {
    }
    return
  }
  func.func @transform_0(%arg0: i32, %arg1: i32) -> (i32, i32) {
    %c0_i32 = arith.constant 0 : i32
    %c0_i32_0 = arith.constant 0 : i32
    return %arg0, %c0_i32 : i32, i32
  }
  func.func @transform_1(%arg0: i32, %arg1: i32) -> (i32, i32) {
    %c0_i32 = arith.constant 0 : i32
    %c0_i32_0 = arith.constant 0 : i32
    return %c0_i32, %arg1 : i32, i32
  }
  func.func @transform_2(%arg0: i32, %arg1: i32) -> (i32, i32) {
    %c0_i32 = arith.constant 0 : i32
    %c0_i32_0 = arith.constant 0 : i32
    return %arg0, %c0_i32 : i32, i32
  }
}

</mosaic_0001>

<bundles_post_ra>
// kernel: tpu_custom_call.1
= control target key start
LH: loop header
LB: loop body
LE: loop exit
PB: predicated region body
PF: predicated region fallthrough
CT: control target
= control target key end

     0   :  { %7 = vsyncpa [#allocation5], 0  ;;  %s1878_s0 = inlined_call_operand.hbm [shape: f32[256,128], index: 0, kind: input, shape index: {}]   ;;  %s1879_s1 = inlined_call_operand.hbm [shape: bf16[128,128], index: 1, kind: input, shape index: {}]   ;;  %s1880_s2 = inlined_call_operand.vmem [shape: s32[256,1], index: 2, kind: output, shape index: {}]  }
   0x1   :  { %8 = vsyncpa [#allocation7], 0  ;;  %s1290_s9 = smov [#allocation4]   ;;  %s1242_s13 = scalar_lea.hbm %s1878_s0, 4096 }
   0x2   :  { %s14_s10 = sshll.u32 %s1290_s9, 4  ;;  %p1243_p0 = scmp.ne.s32.totalorder %s1878_s0, %s1242_s13  ;;  %s15_s10 = int_to_ptr.vmem [resolvable:$true] %s14_s10 }
   0x3   :  { %p1246_p1 = scmp.lt.u32.totalorder %s1242_s13, %s1878_s0 }
   0x5   :  { %p1248_p2 = pnand %p1246_p1, %p1243_p0 }
   0x7   :  { %1251 = shalt.err (!%p1248_p2)
}
   0x8   :  { %s1252_s18 = scalar_lea.vmem %s15_s10, 4096  ;;  %p1257_p4 = scmp.lt.s32.totalorder %s15_s10, %s15_s10 }
   0x9   :  { %p1253_p3 = scmp.ne.s32.totalorder %s15_s10, %s1252_s18  ;;  %p1258_p5 = scmp.lt.s32.totalorder %s1252_s18, %s1252_s18 }
   0xb   :  { %p1259_p6 = por %p1258_p5, %p1257_p4 }
   0xd   :  { %p1260_p7 = pnand %p1259_p6, %p1253_p3 }
   0xf   :  { %1263 = shalt.err (!%p1260_p7)
}
  0x10   :  { %s1291_s19 = smov 128   ;;  %s1292_s20 = smov 8  }
  0x11   :  { %20 = dma.hbm_to_vmem [thread:$0]  %s1878_s0, 4096, %s15_s10, [#allocation5], %s1291_s19, %s1291_s19, %s1292_s20  }
  0x12   :  { %s1293_s23 = smov [#allocation6]   ;;  %s1264_s27 = scalar_lea.hbm %s1879_s1, 1024 }
  0x13   :  { %s26_s24 = sshll.u32 %s1293_s23, 4  ;;  %p1265_p8 = scmp.ne.s32.totalorder %s1879_s1, %s1264_s27  ;;  %s27_s24 = int_to_ptr.vmem [resolvable:$true] %s26_s24 }
  0x14   :  { %p1268_p9 = scmp.lt.u32.totalorder %s1264_s27, %s1879_s1 }
  0x16   :  { %p1270_p10 = pnand %p1268_p9, %p1265_p8 }
  0x18   :  { %1273 = shalt.err (!%p1270_p10)
}
  0x19   :  { %s1274_s4 = scalar_lea.vmem %s27_s24, 1024  ;;  %p1279_p12 = scmp.lt.s32.totalorder %s27_s24, %s27_s24 }
  0x1a   :  { %p1275_p11 = scmp.ne.s32.totalorder %s27_s24, %s1274_s4  ;;  %p1280_p13 = scmp.lt.s32.totalorder %s1274_s4, %s1274_s4 }
  0x1c   :  { %p1281_p0 = por %p1280_p13, %p1279_p12 }
  0x1e   :  { %p1282_p1 = pnand %p1281_p0, %p1275_p11 }
  0x20   :  { %1285 = shalt.err (!%p1282_p1)
}
  0x21   :  { %s1294_s0 = smov 64   ;;  %s1295_s5 = smov 4  }
  0x22   :  { %32 = dma.hbm_to_vmem [thread:$0]  %s1879_s1, 1024, %s27_s24, [#allocation7], %s1294_s0, %s1294_s0, %s1295_s5  }
  0x23   :  { %1286 = dma.done.wait [#allocation5], 4096  }
  0x24   :  { %1287 = vsyncadd [#allocation5], 4294963200 }
  0x25   :  { %1288 = dma.done.wait [#allocation7], 1024  }
  0x26   :  { %1289 = vsyncadd [#allocation7], 4294966272  ;;  %v1234_v0 = vld [vmem:[#allocation6] sm:$0xff]   ;;  %v1235_v1 = vld [vmem:[#allocation6 + $0x8] sm:$0xff]  }
  0x27   :  { %1100 = vmatprep.subr.bf16.mxu0 %v1234_v0  ;;  %1148 = vmatprep.subr.bf16.mxu1 %v1234_v0  ;;  %v1236_v2 = vld [vmem:[#allocation6 + $0x10] sm:$0xff]   ;;  %v1237_v3 = vld [vmem:[#allocation6 + $0x18] sm:$0xff]   ;;  %v108_v4 = vld [vmem:[#allocation4] sm:$0xff] }
  0x28   :  { %1101 = vmatpush3.bf16.msra.mxu0 %v1234_v0  ;;  %1156 = vmatpush3.bf16.msra.mxu1 %v1234_v0  ;;  %v109_v5 = vld [vmem:[#allocation4 + $0x8] sm:$0xff]  ;;  %v124_v6 = vld [vmem:[#allocation4 + $0x80] sm:$0xff]  ;;  %v1240_v12 = vld [vmem:[#allocation6 + $0x30] sm:$0xff]  }
  0x29   :  { %1102 = vmatprep.subr.bf16.mxu0 %v1235_v1  ;;  %1149 = vmatprep.subr.bf16.mxu1 %v1235_v1  ;;  %v140_v7 = vpack.c.bf16 %v109_v5, %v108_v4  ;;  %v125_v8 = vld [vmem:[#allocation4 + $0x88] sm:$0xff]  ;;  %v1238_v10 = vld [vmem:[#allocation6 + $0x20] sm:$0xff]   ;;  %v1241_v13 = vld [vmem:[#allocation6 + $0x38] sm:$0xff]  }
  0x2a   :  { %v148_v9 = vpack.c.bf16 %v125_v8, %v124_v6  ;;  %v1239_v11 = vld [vmem:[#allocation6 + $0x28] sm:$0xff]   ;;  %v110_v14 = vld [vmem:[#allocation4 + $0x10] sm:$0xff]  ;;  %v111_v15 = vld [vmem:[#allocation4 + $0x18] sm:$0xff] }
  0x2b   :  { %1116 = vmatprep.mubr.bf16.mxu0 %v140_v7  ;;  %v126_v16 = vld [vmem:[#allocation4 + $0x90] sm:$0xff]  ;;  %v127_v17 = vld [vmem:[#allocation4 + $0x98] sm:$0xff]  ;;  %v112_v18 = vld [vmem:[#allocation4 + $0x20] sm:$0xff]  ;;  %v141_v22 = vpack.c.bf16 %v111_v15, %v110_v14 }
  0x2c   :  { %1103 = vmatpush3.bf16.msra.mxu0 %v1235_v1  ;;  %1157 = vmatpush3.bf16.msra.mxu1 %v1235_v1  ;;  %v113_v19 = vld [vmem:[#allocation4 + $0x28] sm:$0xff]  ;;  %v128_v20 = vld [vmem:[#allocation4 + $0xa0] sm:$0xff]  ;;  %v149_v23 = vpack.c.bf16 %v127_v17, %v126_v16  ;;  %v114_v26 = vld [vmem:[#allocation4 + $0x30] sm:$0xff] }
  0x2d   :  { %1104 = vmatprep.subr.bf16.mxu0 %v1236_v2  ;;  %1150 = vmatprep.subr.bf16.mxu1 %v1236_v2  ;;  %v129_v21 = vld [vmem:[#allocation4 + $0xa8] sm:$0xff]  ;;  %v142_v24 = vpack.c.bf16 %v113_v19, %v112_v18  ;;  %v115_v27 = vld [vmem:[#allocation4 + $0x38] sm:$0xff]  ;;  %v130_v28 = vld [vmem:[#allocation4 + $0xb0] sm:$0xff] }
  0x2e   :  { %1132 = vmatprep.mubr.bf16.mxu1 %v148_v9  ;;  %v150_v25 = vpack.c.bf16 %v129_v21, %v128_v20  ;;  %v131_v29 = vld [vmem:[#allocation4 + $0xb8] sm:$0xff]  ;;  %v116_v30 = vld [vmem:[#allocation4 + $0x40] sm:$0xff]  ;;  %v117_v31 = vld [vmem:[#allocation4 + $0x48] sm:$0xff]  ;;  %v143_v34 = vpack.c.bf16 %v115_v27, %v114_v26 }
  0x2f   :  { %v132_v32 = vld [vmem:[#allocation4 + $0xc0] sm:$0xff]  ;;  %v133_v33 = vld [vmem:[#allocation4 + $0xc8] sm:$0xff]  ;;  %v151_v35 = vpack.c.bf16 %v131_v29, %v130_v28  ;;  %v144_v36 = vpack.c.bf16 %v117_v31, %v116_v30  ;;  %v118_v38 = vld [vmem:[#allocation4 + $0x50] sm:$0xff]  ;;  %v381_v28 = vlaneseq }
  0x30   :  { %1105 = vmatpush3.bf16.msra.mxu0 %v1236_v2  ;;  %1158 = vmatpush3.bf16.msra.mxu1 %v1236_v2  ;;  %v152_v37 = vpack.c.bf16 %v133_v33, %v132_v32  ;;  %v119_v39 = vld [vmem:[#allocation4 + $0x58] sm:$0xff]  ;;  %v134_v40 = vld [vmem:[#allocation4 + $0xd0] sm:$0xff]  ;;  %v120_v42 = vld [vmem:[#allocation4 + $0x60] sm:$0xff] }
  0x31   :  { %1106 = vmatprep.subr.bf16.mxu0 %v1237_v3  ;;  %1151 = vmatprep.subr.bf16.mxu1 %v1237_v3  ;;  %v135_v41 = vld [vmem:[#allocation4 + $0xd8] sm:$0xff]  ;;  %v121_v43 = vld [vmem:[#allocation4 + $0x68] sm:$0xff]  ;;  %v136_v44 = vld [vmem:[#allocation4 + $0xe0] sm:$0xff]  ;;  %v145_v46 = vpack.c.bf16 %v119_v39, %v118_v38  ;;  %v382_v33 = vand.u32 127, %v381_v28 }
  0x32   :  { %v137_v45 = vld [vmem:[#allocation4 + $0xe8] sm:$0xff]  ;;  %v153_v47 = vpack.c.bf16 %v135_v41, %v134_v40  ;;  %v146_v48 = vpack.c.bf16 %v121_v43, %v120_v42  ;;  %v122_v50 = vld [vmem:[#allocation4 + $0x70] sm:$0xff]  ;;  %v123_v51 = vld [vmem:[#allocation4 + $0x78] sm:$0xff] }
  0x33   :  { %v154_v49 = vpack.c.bf16 %v137_v45, %v136_v44  ;;  %v138_v52 = vld [vmem:[#allocation4 + $0xf0] sm:$0xff]  ;;  %v139_v53 = vld [vmem:[#allocation4 + $0xf8] sm:$0xff]  ;;  %v147_v54 = vpack.c.bf16 %v123_v51, %v122_v50  ;;  %v1499_v40 = vcvt.s32.f32 %v382_v33 }
  0x34   :  { %1107 = vmatpush3.bf16.msra.mxu0 %v1237_v3  ;;  %1159 = vmatpush3.bf16.msra.mxu1 %v1237_v3  ;;  %v155_v55 = vpack.c.bf16 %v139_v53, %v138_v52 }
  0x35   :  { %1108 = vmatprep.subr.bf16.mxu0 %v1238_v10  ;;  %1152 = vmatprep.subr.bf16.mxu1 %v1238_v10 }
  0x38   :  { %1109 = vmatpush3.bf16.msra.mxu0 %v1238_v10  ;;  %1160 = vmatpush3.bf16.msra.mxu1 %v1238_v10 }
  0x39   :  { %1110 = vmatprep.subr.bf16.mxu0 %v1239_v11  ;;  %1153 = vmatprep.subr.bf16.mxu1 %v1239_v11 }
  0x3c   :  { %1111 = vmatpush3.bf16.msra.mxu0 %v1239_v11  ;;  %1161 = vmatpush3.bf16.msra.mxu1 %v1239_v11 }
  0x3d   :  { %1112 = vmatprep.subr.bf16.mxu0 %v1240_v12  ;;  %1154 = vmatprep.subr.bf16.mxu1 %v1240_v12 }
  0x40   :  { %1113 = vmatpush3.bf16.msra.mxu0 %v1240_v12  ;;  %1162 = vmatpush3.bf16.msra.mxu1 %v1240_v12 }
  0x41   :  { %1114 = vmatprep.subr.bf16.mxu0 %v1241_v13  ;;  %1155 = vmatprep.subr.bf16.mxu1 %v1241_v13 }
  0x44   :  { %1115 = vmatpush3.bf16.msra.mxu0 %v1241_v13  ;;  %1163 = vmatpush3.bf16.msra.mxu1 %v1241_v13 }
  0x47   :  { %1117 = vmatmul.mubr.bf16.vlgmr.msra.gmra.mrb[0].mxu0 %v141_v22  ;;  %1133 = vmatmul.mubr.bf16.vlgmr.msra.gmra.mrb[0].mxu1 %v149_v23 }
  0x48   :  { %1120 = vmatprep.mubr.bf16.mxu0 %v142_v24  ;;  %1136 = vmatprep.mubr.bf16.mxu1 %v150_v25 }
  0x4f   :  { %1121 = vmatmul.mubr.bf16.gmra.mrb[4].mxu0 %v143_v34  ;;  %1137 = vmatmul.mubr.bf16.gmra.mrb[4].mxu1 %v151_v35 }
  0x50   :  { %1124 = vmatprep.mubr.bf16.mxu0 %v144_v36  ;;  %1140 = vmatprep.mubr.bf16.mxu1 %v152_v37 }
  0x57   :  { %1125 = vmatmul.mubr.bf16.gmra.mrb[8].mxu0 %v145_v46  ;;  %1141 = vmatmul.mubr.bf16.gmra.mrb[8].mxu1 %v153_v47 }
  0x58   :  { %1128 = vmatprep.mubr.bf16.mxu0 %v146_v48  ;;  %1144 = vmatprep.mubr.bf16.mxu1 %v154_v49 }
  0x5f   :  { %1129 = vmatmul.mubr.bf16.gmra.mrb[12].mxu0 %v147_v54  ;;  %1145 = vmatmul.mubr.bf16.gmra.mrb[12].mxu1 %v155_v55 }
 0x11a   :  { %v1335_v56 = vpop.f32.mrb[0].mxu0  ;;  %v1337_v57 = vpop.f32.mrb[0].mxu1 }
 0x11b   :  { %v1339_v58 = vpop.f32.mrb[1].mxu0  ;;  %v1341_v59 = vpop.f32.mrb[1].mxu1  ;;  %vm436_vm0 = vcmp.gt.f32.partialorder %v1337_v57, -inf  ;;  %vm420_vm1 = vcmp.gt.f32.partialorder %v1335_v56, -inf }
 0x11c   :  { %v1345_v60 = vpop.f32.mrb[2].mxu0  ;;  %v1347_v61 = vpop.f32.mrb[2].mxu1  ;;  %v1352_v62 = vsel %vm436_vm0, %v1337_v57, -inf  ;;  %v1357_v63 = vsel %vm420_vm1, %v1335_v56, -inf  ;;  %vm418_vm2 = vcmp.gt.f32.partialorder %v1339_v58, -inf  ;;  %vm434_vm4 = vcmp.gt.f32.partialorder %v1341_v59, -inf }
 0x11d   :  { %713 = vmax.xlane.f32.xlu0 %v1352_v62  ;;  %v1360_v0 = vpop.f32.mrb[3].mxu1  ;;  %681 = vmax.xlane.f32.xlu1 %v1357_v63  ;;  %v1363_v1 = vpop.f32.mrb[3].mxu0  ;;  %vm421_vm3 = vcmp.gt.f32.partialorder %v1345_v60, -inf  ;;  %v1370_v2 = vsel %vm418_vm2, %v1339_v58, -inf  ;;  %vm437_vm5 = vcmp.gt.f32.partialorder %v1347_v61, -inf  ;;  %v1392_v8 = vsel %vm434_vm4, %v1341_v59, -inf }
 0x11e   :  { %v1375_v3 = vsel %vm421_vm3, %v1345_v60, -inf  ;;  %v1397_v9 = vsel %vm437_vm5, %v1347_v61, -inf  ;;  %vm435_vm6 = vcmp.gt.f32.partialorder %v1360_v0, -inf  ;;  %vm419_vm7 = vcmp.gt.f32.partialorder %v1363_v1, -inf }
 0x11f   :  { %v1416_v14 = vsel %vm435_vm6, %v1360_v0, -inf  ;;  %v1421_v15 = vsel %vm419_vm7, %v1363_v1, -inf  ;;  %v1051_v57 = vsel %vm437_vm5, %v1499_v40, 0.0  ;;  %v1015_v58 = vsel %vm419_vm7, %v1499_v40, 0.0 }
 0x120   :  { %v1047_v59 = vsel %vm435_vm6, %v1499_v40, 0.0 }
 0x121   :  { %677 = vmax.xlane.f32.xlu0 %v1370_v2  ;;  %683 = vmax.xlane.f32.xlu1 %v1375_v3 }
 0x122   :  { %v1381_v4 = vpop.f32.mrb[4].mxu0  ;;  %v1383_v5 = vpop.f32.mrb[4].mxu1 }
 0x123   :  { %v1385_v6 = vpop.f32.mrb[5].mxu0  ;;  %v1387_v7 = vpop.f32.mrb[5].mxu1  ;;  %vm424_vm8 = vcmp.gt.f32.partialorder %v1381_v4, -inf  ;;  %vm1891_vm10 = vcmp.gt.f32.partialorder %v1383_v5, -inf }
 0x124   :  { %v1399_v10 = vpop.f32.mrb[6].mxu0  ;;  %v1401_v11 = vpop.f32.mrb[6].mxu1  ;;  %v1428_v16 = vsel %vm424_vm8, %v1381_v4, -inf  ;;  %v1458_v26 = vsel %vm1891_vm10, %v1383_v5, -inf  ;;  %vm1882_vm12 = vcmp.gt.f32.partialorder %v1385_v6, -inf  ;;  %vm1885_vm14 = vcmp.gt.f32.partialorder %v1387_v7, -inf }
 0x125   :  { %709 = vmax.xlane.f32.xlu0 %v1392_v8  ;;  %715 = vmax.xlane.f32.xlu1 %v1397_v9  ;;  %v1407_v12 = vpop.f32.mrb[7].mxu0  ;;  %v1409_v13 = vpop.f32.mrb[7].mxu1  ;;  %vm1890_vm9 = vcmp.gt.f32.partialorder %v1399_v10, -inf  ;;  %vm1881_vm11 = vcmp.gt.f32.partialorder %v1401_v11, -inf  ;;  %v1480_v34 = vsel %vm1882_vm12, %v1385_v6, -inf  ;;  %v1504_v41 = vsel %vm1885_vm14, %v1387_v7, -inf }
 0x126   :  { %v1433_v17 = vsel %vm1890_vm9, %v1399_v10, -inf  ;;  %v1463_v27 = vsel %vm1881_vm11, %v1401_v11, -inf  ;;  %vm1883_vm13 = vcmp.gt.f32.partialorder %v1407_v12, -inf  ;;  %vm1884_vm15 = vcmp.gt.f32.partialorder %v1409_v13, -inf }
 0x127   :  { %v1485_v35 = vsel %vm1883_vm13, %v1407_v12, -inf  ;;  %v1509_v42 = vsel %vm1884_vm15, %v1409_v13, -inf }
 0x129   :  { %711 = vmax.xlane.f32.xlu1 %v1416_v14  ;;  %679 = vmax.xlane.f32.xlu0 %v1421_v15 }
 0x12a   :  { %v1435_v18 = vpop.f32.mrb[8].mxu0  ;;  %v1437_v19 = vpop.f32.mrb[8].mxu1 }
 0x12b   :  { %v1441_v20 = vpop.f32.mrb[9].mxu0  ;;  %v1443_v21 = vpop.f32.mrb[9].mxu1  ;;  %vm1887_vm12 = vcmp.gt.f32.partialorder %v1435_v18, -inf  ;;  %vm1889_vm15 = vcmp.gt.f32.partialorder %v1437_v19, -inf }
 0x12c   :  { %v1445_v22 = vpop.f32.mrb[10].mxu0  ;;  %v1447_v23 = vpop.f32.mrb[10].mxu1  ;;  %v1520_v44 = vsel %vm1887_vm12, %v1435_v18, -inf  ;;  %v1534_v46 = vsel %vm1889_vm15, %v1437_v19, -inf }
 0x12d   :  { %689 = vmax.xlane.f32.xlu0 %v1428_v16  ;;  %691 = vmax.xlane.f32.xlu1 %v1433_v17  ;;  %v1451_v24 = vpop.f32.mrb[11].mxu0  ;;  %v1453_v25 = vpop.f32.mrb[11].mxu1  ;;  %vm1886_vm13 = vcmp.gt.f32.partialorder %v1445_v22, -inf  ;;  %vm1888_vm14 = vcmp.gt.f32.partialorder %v1447_v23, -inf }
 0x12e   :  { %v1525_v45 = vsel %vm1886_vm13, %v1445_v22, -inf  ;;  %v1539_v47 = vsel %vm1888_vm14, %v1447_v23, -inf  ;;  %vm1895_vm13 = vcmp.gt.f32.partialorder %v1441_v20, -inf  ;;  %vm1892_vm12 = vcmp.gt.f32.partialorder %v1451_v24, -inf }
 0x12f   :  { %v1548_v48 = vsel %vm1895_vm13, %v1441_v20, -inf  ;;  %v1553_v49 = vsel %vm1892_vm12, %v1451_v24, -inf  ;;  %vm1894_vm14 = vcmp.gt.f32.partialorder %v1443_v21, -inf  ;;  %vm1893_vm15 = vcmp.gt.f32.partialorder %v1453_v25, -inf }
 0x130   :  { %v1564_v50 = vsel %vm1894_vm14, %v1443_v21, -inf  ;;  %v1569_v51 = vsel %vm1893_vm15, %v1453_v25, -inf }
 0x131   :  { %721 = vmax.xlane.f32.xlu0 %v1458_v26  ;;  %723 = vmax.xlane.f32.xlu1 %v1463_v27 }
 0x132   :  { %v1469_v29 = vpop.f32.mrb[12].mxu0  ;;  %v1471_v30 = vpop.f32.mrb[12].mxu1 }
 0x133   :  { %1907 = vst [vmem:[#allocation10_spill] sm:$0xff] %v1471_v30  ;;  %v1473_v31 = vpop.f32.mrb[13].mxu0  ;;  %v1475_v32 = vpop.f32.mrb[13].mxu1  ;;  %vm432_vm9 = vcmp.gt.f32.partialorder %v1469_v29, -inf }
 0x134   :  { %1908 = vst [vmem:[#allocation11_spill] sm:$0xff] %v1475_v32  ;;  %v1487_v36 = vpop.f32.mrb[14].mxu0  ;;  %v1147_v37 = vpop.f32.mrb[14].mxu1  ;;  %v1576_v52 = vsel %vm432_vm9, %v1469_v29, -inf  ;;  %vm430_vm15 = vcmp.gt.f32.partialorder %v1473_v31, -inf  ;;  %vm1903_vm13 = vcmp.gt.f32.partialorder %v1475_v32, -inf }
 0x135   :  { %685 = vmax.xlane.f32.xlu0 %v1480_v34  ;;  %687 = vmax.xlane.f32.xlu1 %v1485_v35  ;;  %v1493_v38 = vpop.f32.mrb[15].mxu0  ;;  %v1495_v39 = vpop.f32.mrb[15].mxu1  ;;  %vm449_vm11 = vcmp.gt.f32.partialorder %v1147_v37, -inf  ;;  %vm433_vm10 = vcmp.gt.f32.partialorder %v1487_v36, -inf  ;;  %v1592_v54 = vsel %vm430_vm15, %v1473_v31, -inf  ;;  %v1604_v28 = vsel %vm1903_vm13, %v1475_v32, -inf }
 0x136   :  { %1909 = vst [vmem:[#allocation12_spill] sm:$0xff] %v1493_v38  ;;  %1910 = vst [vmem:[#allocation13_spill] sm:$0xff] %v1495_v39  ;;  %v1515_v43 = vsel %vm449_vm11, %v1499_v40, 0.0  ;;  %v1581_v53 = vsel %vm433_vm10, %v1487_v36, -inf  ;;  %vm1896_vm12 = vcmp.gt.f32.partialorder %v1493_v38, -inf  ;;  %vm1900_vm14 = vcmp.gt.f32.partialorder %v1495_v39, -inf }
 0x137   :  { %1911 = vst [vmem:[#allocation14_spill] sm:$0xff] %v1515_v43  ;;  %v1597_v55 = vsel %vm1896_vm12, %v1493_v38, -inf  ;;  %1913 = vst [vmem:[#allocation16_spill] sm:$0xff] %v1604_v28  ;;  %v1609_v33 = vsel %vm1900_vm14, %v1495_v39, -inf  ;;  %vm448_vm12 = vcmp.gt.f32.partialorder %v1471_v30, -inf  ;;  %v1620_v38 = vsel %vm449_vm11, %v1147_v37, -inf }
 0x138   :  { %1912 = vst [vmem:[#allocation15_spill] sm:$0xff] %v1597_v55  ;;  %1914 = vst [vmem:[#allocation17_spill] sm:$0xff] %v1609_v33  ;;  %v1617_v43 = vsel %vm448_vm12, %v1471_v30, -inf  ;;  %v1049_v37 = vsel %vm436_vm0, %v1499_v40, 0.0  ;;  %v1043_v29 = vsel %vm433_vm10, %v1499_v40, 0.0 }
 0x139   :  { %717 = vmax.xlane.f32.xlu0 %v1504_v41  ;;  %719 = vmax.xlane.f32.xlu1 %v1509_v42  ;;  %1915 = vst [vmem:[#allocation18_spill] sm:$0xff] %v1620_v38 }
 0x13d   :  { %697 = vmax.xlane.f32.xlu0 %v1520_v44  ;;  %699 = vmax.xlane.f32.xlu1 %v1525_v45  ;;  %v1935_v31 = vld [vmem:[#allocation12_spill] sm:$0xff] }
 0x141   :  { %729 = vmax.xlane.f32.xlu0 %v1534_v46  ;;  %731 = vmax.xlane.f32.xlu1 %v1539_v47 }
 0x145   :  { %693 = vmax.xlane.f32.xlu0 %v1548_v48  ;;  %695 = vmax.xlane.f32.xlu1 %v1553_v49 }
 0x149   :  { %725 = vmax.xlane.f32.xlu0 %v1564_v50  ;;  %727 = vmax.xlane.f32.xlu1 %v1569_v51 }
 0x14d   :  { %705 = vmax.xlane.f32.xlu0 %v1576_v52  ;;  %707 = vmax.xlane.f32.xlu1 %v1581_v53 }
 0x151   :  { %701 = vmax.xlane.f32.xlu0 %v1592_v54  ;;  %703 = vmax.xlane.f32.xlu1 %v1597_v55 }
 0x155   :  { %733 = vmax.xlane.f32.xlu0 %v1604_v28  ;;  %735 = vmax.xlane.f32.xlu1 %v1609_v33  ;;  %v1017_v33 = vsel %vm420_vm1, %v1499_v40, 0.0 }
 0x159   :  { %737 = vmax.xlane.f32.xlu0 %v1617_v43  ;;  %739 = vmax.xlane.f32.xlu1 %v1620_v38 }
 0x1aa   :  { %v714_v39 = vpop.xlane.xlu0 %713  ;;  %v682_v32 = vpop.xlane.xlu1 %681 }
 0x1ab   :  { %vm743_vm14 = vcmp.eq.f32.partialorder %v1357_v63, %v682_v32  ;;  %vm759_vm13 = vcmp.eq.f32.partialorder %v1352_v62, %v714_v39  ;;  %v1019_v63 = vsel %vm421_vm3, %v1499_v40, 0.0 }
 0x1ac   :  { %v839_v28 = vsel %vm743_vm14, %v1017_v33, 3e+09  ;;  %v855_v32 = vsel %vm759_vm13, %v1049_v37, 3e+09  ;;  %vm1916_vm13 = vcmp.gt.f32.partialorder %v1383_v5, -inf }
 0x1ad   :  { %873 = vmin.xlane.f32.xlu0 %v839_v28 }
 0x1ae   :  { %v678_v30 = vpop.xlane.xlu0 %677  ;;  %v684_v55 = vpop.xlane.xlu1 %683 }
 0x1af   :  { %vm744_vm11 = vcmp.eq.f32.partialorder %v1375_v3, %v684_v55  ;;  %vm741_vm1 = vcmp.eq.f32.partialorder %v1370_v2, %v678_v30  ;;  %v1013_v3 = vsel %vm418_vm2, %v1499_v40, 0.0 }
 0x1b0   :  { %v840_v38 = vsel %vm744_vm11, %v1019_v63, 3e+09  ;;  %v837_v60 = vsel %vm741_vm1, %v1013_v3, 3e+09  ;;  %vm1918_vm1 = vcmp.gt.f32.partialorder %v1385_v6, -inf }
 0x1b1   :  { %905 = vmin.xlane.f32.xlu0 %v855_v32  ;;  %875 = vmin.xlane.f32.xlu1 %v840_v38 }
 0x1b2   :  { %v710_v56 = vpop.xlane.xlu0 %709  ;;  %v716_v62 = vpop.xlane.xlu1 %715 }
 0x1b3   :  { %vm760_vm14 = vcmp.eq.f32.partialorder %v1397_v9, %v716_v62  ;;  %vm757_vm0 = vcmp.eq.f32.partialorder %v1392_v8, %v710_v56  ;;  %v1045_v9 = vsel %vm434_vm4, %v1499_v40, 0.0 }
 0x1b4   :  { %v856_v39 = vsel %vm760_vm14, %v1051_v57, 3e+09  ;;  %v853_v61 = vsel %vm757_vm0, %v1045_v9, 3e+09  ;;  %vm1919_vm14 = vcmp.gt.f32.partialorder %v1401_v11, -inf }
 0x1b5   :  { %869 = vmin.xlane.f32.xlu0 %v837_v60  ;;  %907 = vmin.xlane.f32.xlu1 %v856_v39  ;;  %v1059_v5 = vsel %vm1919_vm14, %v1499_v40, 0.0  ;;  %vm1925_vm14 = vcmp.gt.f32.partialorder %v1445_v22, -inf }
 0x1b6   :  { %v712_v2 = vpop.xlane.xlu1 %711  ;;  %v680_v30 = vpop.xlane.xlu0 %679 }
 0x1b7   :  { %vm742_vm3 = vcmp.eq.f32.partialorder %v1421_v15, %v680_v30  ;;  %vm758_vm2 = vcmp.eq.f32.partialorder %v1416_v14, %v712_v2  ;;  %v1025_v15 = vsel %vm424_vm8, %v1499_v40, 0.0  ;;  %vm1917_vm8 = vcmp.gt.f32.partialorder %v1399_v10, -inf }
 0x1b8   :  { %v838_v38 = vsel %vm742_vm3, %v1015_v58, 3e+09  ;;  %v854_v28 = vsel %vm758_vm2, %v1047_v59, 3e+09  ;;  %v1027_v4 = vsel %vm1917_vm8, %v1499_v40, 0.0  ;;  %vm1920_vm2 = vcmp.gt.f32.partialorder %v1387_v7, -inf }
 0x1b9   :  { %901 = vmin.xlane.f32.xlu0 %v853_v61  ;;  %871 = vmin.xlane.f32.xlu1 %v838_v38  ;;  %vm1923_vm8 = vcmp.gt.f32.partialorder %v1409_v13, -inf }
 0x1ba   :  { %v690_v8 = vpop.xlane.xlu0 %689  ;;  %v692_v55 = vpop.xlane.xlu1 %691  ;;  %v1055_v7 = vsel %vm1923_vm8, %v1499_v40, 0.0  ;;  %vm1929_vm8 = vcmp.gt.f32.partialorder %v1451_v24, -inf }
 0x1bb   :  { %vm747_vm5 = vcmp.eq.f32.partialorder %v1428_v16, %v690_v8  ;;  %vm748_vm4 = vcmp.eq.f32.partialorder %v1433_v17, %v692_v55  ;;  %v1057_v16 = vsel %vm1916_vm13, %v1499_v40, 0.0  ;;  %vm1922_vm13 = vcmp.gt.f32.partialorder %v1435_v18, -inf }
 0x1bc   :  { %v843_v1 = vsel %vm747_vm5, %v1025_v15, 3e+09  ;;  %v844_v37 = vsel %vm748_vm4, %v1027_v4, 3e+09  ;;  %vm1921_vm5 = vcmp.gt.f32.partialorder %v1407_v12, -inf  ;;  %v1035_v18 = vsel %vm1925_vm14, %v1499_v40, 0.0 }
 0x1bd   :  { %881 = vmin.xlane.f32.xlu0 %v843_v1  ;;  %903 = vmin.xlane.f32.xlu1 %v854_v28  ;;  %v1023_v6 = vsel %vm1921_vm5, %v1499_v40, 0.0  ;;  %vm1927_vm5 = vcmp.gt.f32.partialorder %v1447_v23, -inf  ;;  %v1931_v15 = vld [vmem:[#allocation15_spill] sm:$0xff]  ;;  %v1932_v1 = vld [vmem:[#allocation16_spill] sm:$0xff] }
 0x1be   :  { %v722_v14 = vpop.xlane.xlu0 %721  ;;  %v724_v33 = vpop.xlane.xlu1 %723 }
 0x1bf   :  { %vm763_vm7 = vcmp.eq.f32.partialorder %v1458_v26, %v722_v14  ;;  %vm764_vm6 = vcmp.eq.f32.partialorder %v1463_v27, %v724_v33  ;;  %v1021_v26 = vsel %vm1918_vm1, %v1499_v40, 0.0  ;;  %vm1924_vm1 = vcmp.gt.f32.partialorder %v1437_v19, -inf }
 0x1c0   :  { %v859_v0 = vsel %vm763_vm7, %v1057_v16, 3e+09  ;;  %v860_v32 = vsel %vm764_vm6, %v1059_v5, 3e+09  ;;  %v1067_v19 = vsel %vm1927_vm5, %v1499_v40, 0.0  ;;  %v1937_v16 = vld [vmem:[#allocation17_spill] sm:$0xff] }
 0x1c1   :  { %913 = vmin.xlane.f32.xlu0 %v859_v0  ;;  %883 = vmin.xlane.f32.xlu1 %v844_v37 }
 0x1c2   :  { %v686_v17 = vpop.xlane.xlu0 %685  ;;  %v688_v63 = vpop.xlane.xlu1 %687 }
 0x1c3   :  { %vm745_vm11 = vcmp.eq.f32.partialorder %v1480_v34, %v686_v17  ;;  %vm746_vm0 = vcmp.eq.f32.partialorder %v1485_v35, %v688_v63  ;;  %v1053_v34 = vsel %vm1920_vm2, %v1499_v40, 0.0  ;;  %vm1926_vm2 = vcmp.gt.f32.partialorder %v1441_v20, -inf  ;;  %v1939_v63 = vld [vmem:[#allocation13_spill] sm:$0xff] }
 0x1c4   :  { %v841_v10 = vsel %vm745_vm11, %v1021_v26, 3e+09  ;;  %v842_v62 = vsel %vm746_vm0, %v1023_v6, 3e+09  ;;  %v1031_v20 = vsel %vm1929_vm8, %v1499_v40, 0.0  ;;  %v1073_v17 = vsel %vm448_vm12, %v1499_v40, 0.0 }
 0x1c5   :  { %877 = vmin.xlane.f32.xlu0 %v841_v10  ;;  %915 = vmin.xlane.f32.xlu1 %v860_v32  ;;  %v1941_v32 = vld [vmem:[#allocation18_spill] sm:$0xff] }
 0x1c6   :  { %v718_v27 = vpop.xlane.xlu0 %717  ;;  %v720_v56 = vpop.xlane.xlu1 %719 }
 0x1c7   :  { %vm761_vm3 = vcmp.eq.f32.partialorder %v1504_v41, %v718_v27  ;;  %vm762_vm4 = vcmp.eq.f32.partialorder %v1509_v42, %v720_v56  ;;  %v1033_v41 = vsel %vm1922_vm13, %v1499_v40, 0.0  ;;  %vm1928_vm13 = vcmp.gt.f32.partialorder %v1443_v21, -inf  ;;  %v1942_v27 = vld [vmem:[#allocation14_spill] sm:$0xff] }
 0x1c8   :  { %v857_v11 = vsel %vm761_vm3, %v1053_v34, 3e+09  ;;  %v858_v57 = vsel %vm762_vm4, %v1055_v7, 3e+09 }
 0x1c9   :  { %909 = vmin.xlane.f32.xlu0 %v857_v11  ;;  %879 = vmin.xlane.f32.xlu1 %v842_v62 }
 0x1ca   :  { %v698_v35 = vpop.xlane.xlu0 %697  ;;  %v700_v3 = vpop.xlane.xlu1 %699 }
 0x1cb   :  { %vm751_vm7 = vcmp.eq.f32.partialorder %v1520_v44, %v698_v35  ;;  %vm752_vm6 = vcmp.eq.f32.partialorder %v1525_v45, %v700_v3  ;;  %v1065_v44 = vsel %vm1924_vm1, %v1499_v40, 0.0  ;;  %vm1930_vm1 = vcmp.gt.f32.partialorder %v1453_v25, -inf }
 0x1cc   :  { %v847_v12 = vsel %vm751_vm7, %v1033_v41, 3e+09  ;;  %v848_v39 = vsel %vm752_vm6, %v1035_v18, 3e+09  ;;  %v1063_v21 = vsel %vm1930_vm1, %v1499_v40, 0.0 }
 0x1cd   :  { %889 = vmin.xlane.f32.xlu0 %v847_v12  ;;  %911 = vmin.xlane.f32.xlu1 %v858_v57 }
 0x1ce   :  { %v730_v42 = vpop.xlane.xlu0 %729  ;;  %v732_v60 = vpop.xlane.xlu1 %731 }
 0x1cf   :  { %vm767_vm11 = vcmp.eq.f32.partialorder %v1534_v46, %v730_v42  ;;  %vm768_vm0 = vcmp.eq.f32.partialorder %v1539_v47, %v732_v60  ;;  %v1029_v46 = vsel %vm1926_vm2, %v1499_v40, 0.0 }
 0x1d0   :  { %v863_v13 = vsel %vm767_vm11, %v1065_v44, 3e+09  ;;  %v864_v30 = vsel %vm768_vm0, %v1067_v19, 3e+09 }
 0x1d1   :  { %921 = vmin.xlane.f32.xlu0 %v863_v13  ;;  %891 = vmin.xlane.f32.xlu1 %v848_v39 }
 0x1d2   :  { %v694_v45 = vpop.xlane.xlu0 %693  ;;  %v696_v2 = vpop.xlane.xlu1 %695 }
 0x1d3   :  { %vm749_vm3 = vcmp.eq.f32.partialorder %v1548_v48, %v694_v45  ;;  %vm750_vm4 = vcmp.eq.f32.partialorder %v1553_v49, %v696_v2  ;;  %v1061_v48 = vsel %vm1928_vm13, %v1499_v40, 0.0  ;;  %vm965_vm13 = vcmask 7168  }
 0x1d4   :  { %v845_v22 = vsel %vm749_vm3, %v1029_v46, 3e+09  ;;  %v846_v58 = vsel %vm750_vm4, %v1031_v20, 3e+09  ;;  %vm1940_vm4 = vcmp.gt.f32.partialorder %v1939_v63, -inf }
 0x1d5   :  { %885 = vmin.xlane.f32.xlu0 %v845_v22  ;;  %923 = vmin.xlane.f32.xlu1 %v864_v30  ;;  %v1071_v26 = vsel %vm1940_vm4, %v1499_v40, 0.0 }
 0x1d6   :  { %v726_v47 = vpop.xlane.xlu0 %725  ;;  %v728_v9 = vpop.xlane.xlu1 %727 }
 0x1d7   :  { %vm765_vm7 = vcmp.eq.f32.partialorder %v1564_v50, %v726_v47  ;;  %vm766_vm6 = vcmp.eq.f32.partialorder %v1569_v51, %v728_v9  ;;  %v1041_v50 = vsel %vm432_vm9, %v1499_v40, 0.0 }
 0x1d8   :  { %v861_v23 = vsel %vm765_vm7, %v1061_v48, 3e+09  ;;  %v862_v38 = vsel %vm766_vm6, %v1063_v21, 3e+09 }
 0x1d9   :  { %917 = vmin.xlane.f32.xlu0 %v861_v23  ;;  %887 = vmin.xlane.f32.xlu1 %v846_v58 }
 0x1da   :  { %v706_v49 = vpop.xlane.xlu0 %705  ;;  %v708_v61 = vpop.xlane.xlu1 %707 }
 0x1db   :  { %vm755_vm11 = vcmp.eq.f32.partialorder %v1576_v52, %v706_v49  ;;  %vm756_vm14 = vcmp.eq.f32.partialorder %v1581_v53, %v708_v61  ;;  %v1037_v52 = vsel %vm430_vm15, %v1499_v40, 0.0  ;;  %vm1936_vm15 = vcmp.gt.f32.partialorder %v1935_v31, -inf }
 0x1dc   :  { %v851_v24 = vsel %vm755_vm11, %v1041_v50, 3e+09  ;;  %v852_v55 = vsel %vm756_vm14, %v1043_v29, 3e+09  ;;  %v1039_v14 = vsel %vm1936_vm15, %v1499_v40, 0.0 }
 0x1dd   :  { %897 = vmin.xlane.f32.xlu0 %v851_v24  ;;  %919 = vmin.xlane.f32.xlu1 %v862_v38 }
 0x1de   :  { %v702_v51 = vpop.xlane.xlu0 %701  ;;  %v704_v8 = vpop.xlane.xlu1 %703 }
 0x1df   :  { %vm753_vm0 = vcmp.eq.f32.partialorder %v1592_v54, %v702_v51  ;;  %vm754_vm9 = vcmp.eq.f32.partialorder %v1931_v15, %v704_v8  ;;  %v1933_v54 = vld [vmem:[#allocation11_spill] sm:$0xff] }
 0x1e0   :  { %v849_v25 = vsel %vm753_vm0, %v1037_v52, 3e+09  ;;  %vm1934_vm2 = vcmp.gt.f32.partialorder %v1933_v54, -inf  ;;  %v850_v33 = vsel %vm754_vm9, %v1039_v14, 3e+09 }
 0x1e1   :  { %893 = vmin.xlane.f32.xlu0 %v849_v25  ;;  %899 = vmin.xlane.f32.xlu1 %v852_v55  ;;  %v1069_v28 = vsel %vm1934_vm2, %v1499_v40, 0.0 }
 0x1e2   :  { %v734_v53 = vpop.xlane.xlu0 %733  ;;  %v736_v59 = vpop.xlane.xlu1 %735 }
 0x1e3   :  { %vm769_vm3 = vcmp.eq.f32.partialorder %v1932_v1, %v734_v53  ;;  %vm770_vm10 = vcmp.eq.f32.partialorder %v1937_v16, %v736_v59 }
 0x1e4   :  { %v865_v36 = vsel %vm769_vm3, %v1069_v28, 3e+09  ;;  %v866_v10 = vsel %vm770_vm10, %v1071_v26, 3e+09 }
 0x1e5   :  { %925 = vmin.xlane.f32.xlu0 %v865_v36  ;;  %895 = vmin.xlane.f32.xlu1 %v850_v33 }
 0x1e6   :  { %v738_v4 = vpop.xlane.xlu0 %737  ;;  %v740_v0 = vpop.xlane.xlu1 %739 }
 0x1e7   :  { %vm771_vm5 = vcmp.eq.f32.partialorder %v1617_v43, %v738_v4  ;;  %vm772_vm7 = vcmp.eq.f32.partialorder %v1941_v32, %v740_v0 }
 0x1e8   :  { %v867_v5 = vsel %vm771_vm5, %v1073_v17, 3e+09  ;;  %v868_v56 = vsel %vm772_vm7, %v1942_v27, 3e+09 }
 0x1e9   :  { %929 = vmin.xlane.f32.xlu0 %v867_v5  ;;  %927 = vmin.xlane.f32.xlu1 %v866_v10 }
 0x1ed   :  { %931 = vmin.xlane.f32.xlu1 %v868_v56 }
 0x23a   :  { %v874_v34 = vpop.xlane.xlu0 %873 }
 0x23b   :  { %v1168_v6 = vtrunc.f32 %v874_v34 }
 0x23d   :  { %v1169_v43 = vcvt.f32.s32 %v1168_v6 }
 0x23e   :  { %v906_v11 = vpop.xlane.xlu0 %905  ;;  %v876_v62 = vpop.xlane.xlu1 %875 }
 0x23f   :  { %968 = vst.msk [vmem:[%s1880_s2 + $0x10] sm:$0xff] %vm965_vm13, %v1169_v43  ;;  %v1200_v40 = vtrunc.f32 %v906_v11  ;;  %v1170_v35 = vtrunc.f32 %v876_v62 }
 0x241   :  { %v1201_v3 = vcvt.f32.s32 %v1200_v40  ;;  %v1171_v41 = vcvt.f32.s32 %v1170_v35 }
 0x242   :  { %v870_v7 = vpop.xlane.xlu0 %869  ;;  %v908_v12 = vpop.xlane.xlu1 %907 }
 0x243   :  { %984 = vst.msk [vmem:[%s1880_s2 + $0x90] sm:$0xff] %vm965_vm13, %v1201_v3  ;;  %969 = vst.msk [vmem:[%s1880_s2 + $0x18] sm:$0xff] %vm965_vm13, %v1171_v41  ;;  %v1164_v57 = vtrunc.f32 %v870_v7  ;;  %v1202_v42 = vtrunc.f32 %v908_v12 }
 0x245   :  { %v1165_v60 = vcvt.f32.s32 %v1164_v57  ;;  %v1203_v44 = vcvt.f32.s32 %v1202_v42 }
 0x246   :  { %v902_v18 = vpop.xlane.xlu0 %901  ;;  %v872_v13 = vpop.xlane.xlu1 %871 }
 0x247   :  { %966 = vst.msk [vmem:[%s1880_s2] sm:$0xff] %vm965_vm13, %v1165_v60  ;;  %985 = vst.msk [vmem:[%s1880_s2 + $0x98] sm:$0xff] %vm965_vm13, %v1203_v44  ;;  %v1196_v39 = vtrunc.f32 %v902_v18  ;;  %v1166_v45 = vtrunc.f32 %v872_v13 }
 0x249   :  { %v1197_v2 = vcvt.f32.s32 %v1196_v39  ;;  %v1167_v46 = vcvt.f32.s32 %v1166_v45 }
 0x24a   :  { %v882_v19 = vpop.xlane.xlu0 %881  ;;  %v904_v22 = vpop.xlane.xlu1 %903 }
 0x24b   :  { %982 = vst.msk [vmem:[%s1880_s2 + $0x80] sm:$0xff] %vm965_vm13, %v1197_v2  ;;  %967 = vst.msk [vmem:[%s1880_s2 + $0x8] sm:$0xff] %vm965_vm13, %v1167_v46  ;;  %v1176_v30 = vtrunc.f32 %v882_v19  ;;  %v1198_v47 = vtrunc.f32 %v904_v22 }
 0x24d   :  { %v1177_v9 = vcvt.f32.s32 %v1176_v30  ;;  %v1199_v48 = vcvt.f32.s32 %v1198_v47 }
 0x24e   :  { %v914_v20 = vpop.xlane.xlu0 %913  ;;  %v884_v23 = vpop.xlane.xlu1 %883 }
 0x24f   :  { %972 = vst.msk [vmem:[%s1880_s2 + $0x30] sm:$0xff] %vm965_vm13, %v1177_v9  ;;  %983 = vst.msk [vmem:[%s1880_s2 + $0x88] sm:$0xff] %vm965_vm13, %v1199_v48  ;;  %v1208_v58 = vtrunc.f32 %v914_v20  ;;  %v1178_v49 = vtrunc.f32 %v884_v23 }
 0x251   :  { %v1209_v61 = vcvt.f32.s32 %v1208_v58  ;;  %v1179_v50 = vcvt.f32.s32 %v1178_v49 }
 0x252   :  { %v878_v21 = vpop.xlane.xlu0 %877  ;;  %v916_v24 = vpop.xlane.xlu1 %915 }
 0x253   :  { %988 = vst.msk [vmem:[%s1880_s2 + $0xb0] sm:$0xff] %vm965_vm13, %v1209_v61  ;;  %973 = vst.msk [vmem:[%s1880_s2 + $0x38] sm:$0xff] %vm965_vm13, %v1179_v50  ;;  %v1172_v38 = vtrunc.f32 %v878_v21  ;;  %v1210_v51 = vtrunc.f32 %v916_v24 }
 0x255   :  { %v1173_v8 = vcvt.f32.s32 %v1172_v38  ;;  %v1211_v52 = vcvt.f32.s32 %v1210_v51 }
 0x256   :  { %v910_v29 = vpop.xlane.xlu0 %909  ;;  %v880_v25 = vpop.xlane.xlu1 %879 }
 0x257   :  { %970 = vst.msk [vmem:[%s1880_s2 + $0x20] sm:$0xff] %vm965_vm13, %v1173_v8  ;;  %989 = vst.msk [vmem:[%s1880_s2 + $0xb8] sm:$0xff] %vm965_vm13, %v1211_v52  ;;  %v1204_v55 = vtrunc.f32 %v910_v29  ;;  %v1174_v15 = vtrunc.f32 %v880_v25 }
 0x259   :  { %v1205_v53 = vcvt.f32.s32 %v1204_v55  ;;  %v1175_v59 = vcvt.f32.s32 %v1174_v15 }
 0x25a   :  { %v890_v1 = vpop.xlane.xlu0 %889  ;;  %v912_v54 = vpop.xlane.xlu1 %911 }
 0x25b   :  { %986 = vst.msk [vmem:[%s1880_s2 + $0xa0] sm:$0xff] %vm965_vm13, %v1205_v53  ;;  %971 = vst.msk [vmem:[%s1880_s2 + $0x28] sm:$0xff] %vm965_vm13, %v1175_v59  ;;  %v1184_v28 = vtrunc.f32 %v890_v1  ;;  %v1206_v31 = vtrunc.f32 %v912_v54 }
 0x25d   :  { %v1185_v14 = vcvt.f32.s32 %v1184_v28  ;;  %v1207_v36 = vcvt.f32.s32 %v1206_v31 }
 0x25e   :  { %v922_v33 = vpop.xlane.xlu0 %921  ;;  %v892_v16 = vpop.xlane.xlu1 %891 }
 0x25f   :  { %976 = vst.msk [vmem:[%s1880_s2 + $0x50] sm:$0xff] %vm965_vm13, %v1185_v14  ;;  %987 = vst.msk [vmem:[%s1880_s2 + $0xa8] sm:$0xff] %vm965_vm13, %v1207_v36  ;;  %v1216_v4 = vtrunc.f32 %v922_v33  ;;  %v1186_v0 = vtrunc.f32 %v892_v16 }
 0x261   :  { %v1217_v37 = vcvt.f32.s32 %v1216_v4  ;;  %v1187_v17 = vcvt.f32.s32 %v1186_v0 }
 0x262   :  { %v886_v63 = vpop.xlane.xlu0 %885  ;;  %v924_v26 = vpop.xlane.xlu1 %923 }
 0x263   :  { %992 = vst.msk [vmem:[%s1880_s2 + $0xd0] sm:$0xff] %vm965_vm13, %v1217_v37  ;;  %977 = vst.msk [vmem:[%s1880_s2 + $0x58] sm:$0xff] %vm965_vm13, %v1187_v17  ;;  %v1180_v5 = vtrunc.f32 %v886_v63  ;;  %v1218_v10 = vtrunc.f32 %v924_v26 }
 0x265   :  { %v1181_v32 = vcvt.f32.s32 %v1180_v5  ;;  %v1219_v27 = vcvt.f32.s32 %v1218_v10 }
 0x266   :  { %v918_v56 = vpop.xlane.xlu0 %917  ;;  %v888_v34 = vpop.xlane.xlu1 %887 }
 0x267   :  { %974 = vst.msk [vmem:[%s1880_s2 + $0x40] sm:$0xff] %vm965_vm13, %v1181_v32  ;;  %993 = vst.msk [vmem:[%s1880_s2 + $0xd8] sm:$0xff] %vm965_vm13, %v1219_v27  ;;  %v1212_v6 = vtrunc.f32 %v918_v56  ;;  %v1182_v43 = vtrunc.f32 %v888_v34 }
 0x269   :  { %v1213_v11 = vcvt.f32.s32 %v1212_v6  ;;  %v1183_v62 = vcvt.f32.s32 %v1182_v43 }
 0x26a   :  { %v898_v40 = vpop.xlane.xlu0 %897  ;;  %v920_v35 = vpop.xlane.xlu1 %919 }
 0x26b   :  { %990 = vst.msk [vmem:[%s1880_s2 + $0xc0] sm:$0xff] %vm965_vm13, %v1213_v11  ;;  %975 = vst.msk [vmem:[%s1880_s2 + $0x48] sm:$0xff] %vm965_vm13, %v1183_v62  ;;  %v1192_v3 = vtrunc.f32 %v898_v40  ;;  %v1214_v41 = vtrunc.f32 %v920_v35 }
 0x26d   :  { %v1193_v7 = vcvt.f32.s32 %v1192_v3  ;;  %v1215_v12 = vcvt.f32.s32 %v1214_v41 }
 0x26e   :  { %v894_v57 = vpop.xlane.xlu0 %893  ;;  %v900_v42 = vpop.xlane.xlu1 %899 }
 0x26f   :  { %980 = vst.msk [vmem:[%s1880_s2 + $0x70] sm:$0xff] %vm965_vm13, %v1193_v7  ;;  %991 = vst.msk [vmem:[%s1880_s2 + $0xc8] sm:$0xff] %vm965_vm13, %v1215_v12  ;;  %v1188_v60 = vtrunc.f32 %v894_v57  ;;  %v1194_v44 = vtrunc.f32 %v900_v42 }
 0x271   :  { %v1189_v18 = vcvt.f32.s32 %v1188_v60  ;;  %v1195_v13 = vcvt.f32.s32 %v1194_v44 }
 0x272   :  { %v926_v39 = vpop.xlane.xlu0 %925  ;;  %v896_v45 = vpop.xlane.xlu1 %895 }
 0x273   :  { %978 = vst.msk [vmem:[%s1880_s2 + $0x60] sm:$0xff] %vm965_vm13, %v1189_v18  ;;  %981 = vst.msk [vmem:[%s1880_s2 + $0x78] sm:$0xff] %vm965_vm13, %v1195_v13  ;;  %v1220_v2 = vtrunc.f32 %v926_v39  ;;  %v1190_v46 = vtrunc.f32 %v896_v45 }
 0x275   :  { %v1221_v19 = vcvt.f32.s32 %v1220_v2  ;;  %v1191_v22 = vcvt.f32.s32 %v1190_v46 }
 0x276   :  { %v930_v30 = vpop.xlane.xlu0 %929  ;;  %v928_v47 = vpop.xlane.xlu1 %927 }
 0x277   :  { %994 = vst.msk [vmem:[%s1880_s2 + $0xe0] sm:$0xff] %vm965_vm13, %v1221_v19  ;;  %979 = vst.msk [vmem:[%s1880_s2 + $0x68] sm:$0xff] %vm965_vm13, %v1191_v22  ;;  %v1224_v9 = vtrunc.f32 %v930_v30  ;;  %v1222_v48 = vtrunc.f32 %v928_v47 }
 0x279   :  { %v1225_v20 = vcvt.f32.s32 %v1224_v9  ;;  %v1223_v23 = vcvt.f32.s32 %v1222_v48 }
 0x27a   :  { %v932_v58 = vpop.xlane.xlu1 %931 }
 0x27b   :  { %996 = vst.msk [vmem:[%s1880_s2 + $0xf0] sm:$0xff] %vm965_vm13, %v1225_v20  ;;  %995 = vst.msk [vmem:[%s1880_s2 + $0xe8] sm:$0xff] %vm965_vm13, %v1223_v23  ;;  %v1226_v49 = vtrunc.f32 %v932_v58 }
 0x27d   :  { %v1227_v61 = vcvt.f32.s32 %v1226_v49 }
 0x27f   :  { %997 = vst.msk [vmem:[%s1880_s2 + $0xf8] sm:$0xff] %vm965_vm13, %v1227_v61 }
 0x280   :  { %1002 = vsyncpa [#allocation5], 1 }
 0x281   :  { %1003 = vsyncpa [#allocation7], 1 }

</bundles_post_ra>
